<compile_context>
chip_gen: v7x
topology: tpu7x:2x2x1
jax: 0.10.0
libtpu: 0.0.40
codegen_flags: <defaults>
</compile_context>

<pallas_src>
import jax
import jax.numpy as jnp
from jax.experimental import pallas as pl
from jax.experimental.pallas import tpu as pltpu


def _round_up(x, m):
    return ((x + m - 1) // m) * m


def _ms_model_em_kernel(x_ref, w1_ref, b1_ref, w2_ref, b2_ref, out_ref):
    """One (batch-tile, column-tile) grid step.

    x_ref   : (tb, Din) bf16  selected-token embeddings (one row per batch elem)
    w1_ref  : (Din, H)  bf16  first dense weight        (constant block, 1 buffer)
    b1_ref  : (1, H)    f32   first dense bias          (constant block, 1 buffer)
    w2_ref  : (H, tn)   bf16  second dense weight, column tile
    b2_ref  : (1, tn)   f32   second dense bias, column tile
    out_ref : (tb, tn)  f32   encoder_in rows, column tile
    """
    # (tb, Din) @ (Din, H) on the MXU with f32 accumulation; bias + tanh in f32
    # (v5e has no bf16 VPU/EUP path, so elementwise stays f32 on all gens).
    h1 = jnp.dot(x_ref[...], w1_ref[...], preferred_element_type=jnp.float32)
    h1 = jnp.tanh(h1 + b1_ref[...])
    # Column tile of the second matmul: (tb, H) @ (H, tn), bf16 in / f32 acc.
    h2 = jnp.dot(h1.astype(w2_ref.dtype), w2_ref[...],
                 preferred_element_type=jnp.float32) + b2_ref[...]
    out_ref[...] = h2.astype(out_ref.dtype)


def _vmem_budget(tb, din, h, tn, out_dtype):
    """Scoped-VMEM budget: varying blocks double-buffered, constants single."""
    out_size = jnp.dtype(out_dtype).itemsize
    b = 0
    b += 2 * tb * din * 2          # x tile (bf16), double-buffered
    b += 1 * din * h * 2           # w1 (bf16), single buffer (Buffered(1))
    b += 1 * h * 4                 # b1 (f32), single buffer
    b += 2 * h * tn * 2            # w2 column tile (bf16), double-buffered
    b += 2 * tn * 4                # b2 column tile (f32), double-buffered
    b += 2 * tb * tn * out_size    # out tile, double-buffered
    b += tb * h * 4 + tb * tn * 4  # h1 / h2 intermediates (compiler scratch)
    b = int(b * 1.25) + (2 << 20)  # ~25% headroom + fixed slack
    return max(4 << 20, min(b, 64 << 20))   # clamp to v7x physical VMEM


def _build_pallas_call(b_pad, tb, din, h, tn, out_dtype, vmem_bytes,
                       single_buffer_constants):
    const_kwargs = {}
    if single_buffer_constants:
        # Constant-index blocks never change across grid steps -> one buffer.
        const_kwargs = dict(pipeline_mode=pl.Buffered(1))

    in_specs = [
        pl.BlockSpec((tb, din), lambda i, n: (i, 0)),                   # x_sel
        pl.BlockSpec((din, h), lambda i, n: (0, 0), **const_kwargs),    # w1
        pl.BlockSpec((1, h), lambda i, n: (0, 0), **const_kwargs),      # b1
        pl.BlockSpec((h, tn), lambda i, n: (0, n)),                     # w2 col tile
        pl.BlockSpec((1, tn), lambda i, n: (0, n)),                     # b2 col tile
    ]
    out_specs = pl.BlockSpec((tb, tn), lambda i, n: (i, n))

    return pl.pallas_call(
        _ms_model_em_kernel,
        out_shape=jax.ShapeDtypeStruct((b_pad, h), out_dtype),
        grid_spec=pltpu.PrefetchScalarGridSpec(
            num_scalar_prefetch=0,
            grid=(b_pad // tb, h // tn),
            in_specs=in_specs,
            out_specs=out_specs,
        ),
        compiler_params=pltpu.CompilerParams(
            dimension_semantics=("parallel", "parallel"),
            vmem_limit_bytes=vmem_bytes,
        ),
    )


def ms_model_em_forward(input_ids, attention_mask, params, *,
                        out_dtype=jnp.float32, tb_max=256, tn_max=512):
    """First-call forward of MSModel_EM: returns persona_vector == encoder_in (B, H)."""
    embed, w1, b1, w2, b2 = (
        params["embed"], params["w1"], params["b1"], params["w2"], params["b2"]
    )
    B, _S = input_ids.shape
    Din = embed.shape[1]
    H = w2.shape[1]

    # --- wrapper glue: first position where attention_mask != 1 (else 0) -----
    pos = jnp.argmax((attention_mask != 1).astype(jnp.int32), axis=1)        # (B,)

    # --- wrapper glue: gather the selected token per row, embed only those ---
    # (valid because the stand-in "model" is strictly position-wise).
    sel_ids = jnp.take_along_axis(input_ids, pos[:, None], axis=1)[:, 0]     # (B,)
    x_sel = jnp.take(embed, sel_ids, axis=0).astype(jnp.bfloat16)            # (B, Din)

    # --- bf16 MXU path (f32 accumulation), f32 biases -------------------------
    w1b = w1.astype(jnp.bfloat16)
    w2b = w2.astype(jnp.bfloat16)
    b1f = b1.reshape(1, H).astype(jnp.float32)
    b2f = b2.reshape(1, H).astype(jnp.float32)

    # --- batch tiling: pad to bf16 sublane packing, tile at <= tb_max rows ----
    if B <= tb_max:
        tb = _round_up(B, 16)           # bf16 packs 16 rows per sublane tile
        b_pad = tb
    else:
        tb = tb_max
        b_pad = _round_up(B, tb)
    if b_pad != B:
        x_sel = jnp.pad(x_sel, ((0, b_pad - B), (0, 0)))

    # --- column tiling of the dominant (H, H) matmul ---------------------------
    if H <= tn_max or H % tn_max != 0:
        tn = H
    else:
        tn = tn_max

    vmem_bytes = _vmem_budget(tb, Din, H, tn, out_dtype)

    try:
        call = _build_pallas_call(b_pad, tb, Din, H, tn, out_dtype, vmem_bytes,
                                  single_buffer_constants=True)
        out = call(x_sel, w1b, b1f, w2b, b2f)
    except Exception:
        # Fallback for jax versions rejecting pipeline_mode=pl.Buffered(1):
        # identical kernel, default double-buffering on the constant blocks.
        call = _build_pallas_call(b_pad, tb, Din, H, tn, out_dtype, vmem_bytes,
                                  single_buffer_constants=False)
        out = call(x_sel, w1b, b1f, w2b, b2f)

    return out[:B]                                                        # (B, H)


def _reference_forward_bf16(input_ids, attention_mask, params):
    """Pure-JAX reference using the same bf16-compute / f32-accumulate path."""
    embed, w1, b1, w2, b2 = (
        params["embed"], params["w1"], params["b1"], params["w2"], params["b2"]
    )
    pos = jnp.argmax((attention_mask != 1).astype(jnp.int32), axis=1)
    sel_ids = jnp.take_along_axis(input_ids, pos[:, None], axis=1)[:, 0]
    x = jnp.take(embed, sel_ids, axis=0).astype(jnp.bfloat16)
    h1 = jnp.tanh(
        jnp.dot(x, w1.astype(jnp.bfloat16), preferred_element_type=jnp.float32)
        + b1.astype(jnp.float32)
    )
    h = jnp.dot(h1.astype(jnp.bfloat16), w2.astype(jnp.bfloat16),
                preferred_element_type=jnp.float32) + b2.astype(jnp.float32)
    return h


def _reference_forward_full_f32(input_ids, attention_mask, params):
    """f32 reference mirroring the ORIGINAL path: full (B,S,H) hidden, then gather."""
    embed, w1, b1, w2, b2 = (
        params["embed"], params["w1"], params["b1"], params["w2"], params["b2"]
    )
    x = jnp.take(embed, input_ids, axis=0)                    # (B, S, Din)
    h = jnp.tanh(x @ w1 + b1) @ w2 + b2                       # (B, S, H)
    pos = jnp.argmax((attention_mask != 1).astype(jnp.int32), axis=1)
    return h[jnp.arange(x.shape[0]), pos]                     # (B, H)


def _make_params(key, vocab, din, h):
    k_embed, k_w1, k_w2 = jax.random.split(key, 3)
    return {
        "embed": jax.random.normal(k_embed, (vocab, din), jnp.float32) * 0.1,
        "w1": jax.random.normal(k_w1, (din, h), jnp.float32) * 0.1,
        "b1": jnp.zeros((1, h), jnp.float32),
        "w2": jax.random.normal(k_w2, (h, h), jnp.float32) * 0.1,
        "b2": jnp.zeros((1, h), jnp.float32),
    }


if __name__ == "__main__":
    root_key = jax.random.PRNGKey(0)
    k_p1, k_i1, k_p2, k_i2, k_m2 = jax.random.split(root_key, 5)

    # ---------- test 1: small demo shape (B=2, S=8, Din=32, H=128) -----------
    B, S, VOCAB, DIN, H = 2, 8, 50, 32, 128
    params = _make_params(k_p1, VOCAB, DIN, H)
    input_ids = jax.random.randint(k_i1, (B, S), 0, VOCAB, dtype=jnp.int32)
    # row 0: 3 real tokens then padding (first !=1 position is 3)
    # row 1: all ones (no !=1 position -> argmax returns 0)
    attention_mask = jnp.array(
        [[1, 1, 1, 0, 0, 0, 0, 0],
         [1, 1, 1, 1, 1, 1, 1, 1]], dtype=jnp.int32
    )

    persona_vector = jax.block_until_ready(
        ms_model_em_forward(input_ids, attention_mask, params))
    assert persona_vector.shape == (B, H)

    ref_bf16 = _reference_forward_bf16(input_ids, attention_mask, params)
    assert jnp.allclose(persona_vector, ref_bf16, atol=1e-3, rtol=1e-3), \
        "mismatch vs bf16-matched reference"

    ref_f32 = _reference_forward_full_f32(input_ids, attention_mask, params)
    assert jnp.allclose(persona_vector, ref_f32, atol=1e-2, rtol=1e-2), \
        "mismatch vs f32 full-path reference"

    # ---------- test 2: exercise multi-tile batch axis + column axis ---------
    B2, S2, H2 = 40, 8, 256
    params2 = _make_params(k_p2, VOCAB, DIN, H2)
    ids2 = jax.random.randint(k_i2, (B2, S2), 0, VOCAB, dtype=jnp.int32)
    mask2 = (jax.random.uniform(k_m2, (B2, S2)) > 0.3).astype(jnp.int32)

    out2 = jax.block_until_ready(
        ms_model_em_forward(ids2, mask2, params2, tb_max=16, tn_max=128))
    assert out2.shape == (B2, H2)
    assert jnp.allclose(out2, _reference_forward_bf16(ids2, mask2, params2),
                        atol=1e-3, rtol=1e-3), "mismatch on tiled-grid path"

    print("KERNEL_OK")
</pallas_src>

<mosaic_0001>
module attributes {stable_mosaic.version = 11 : i64} {
  func.func @_ms_model_em_kernel(%arg0: i32, %arg1: i32, %arg2: memref<16x32xbf16, #tpu.memory_space<vmem>>, %arg3: memref<32x128xbf16, #tpu.memory_space<vmem>>, %arg4: memref<1x128xf32, #tpu.memory_space<vmem>>, %arg5: memref<128x128xbf16, #tpu.memory_space<vmem>>, %arg6: memref<1x128xf32, #tpu.memory_space<vmem>>, %arg7: memref<16x128xf32, #tpu.memory_space<vmem>>) attributes {dimension_semantics = [#tpu.dimension_semantics<parallel>, #tpu.dimension_semantics<parallel>], iteration_bounds = array<i64: 1, 1>, scalar_prefetch = 0 : i64, scratch_operands = 0 : i64, tpu.core_type = #tpu.core_type<tc>, window_params = [{transform_indices = @transform_0, window_bounds = array<i64: 16, 32>}, {pipeline_mode = #tpu.pipeline_mode<synchronous>, transform_indices = @transform_1, window_bounds = array<i64: 32, 128>}, {pipeline_mode = #tpu.pipeline_mode<synchronous>, transform_indices = @transform_2, window_bounds = array<i64: 1, 128>}, {transform_indices = @transform_3, window_bounds = array<i64: 128, 128>}, {transform_indices = @transform_4, window_bounds = array<i64: 1, 128>}, {transform_indices = @transform_5, window_bounds = array<i64: 16, 128>}]} {
    %c0 = arith.constant 0 : index
    %c0_0 = arith.constant 0 : index
    %0 = vector.load %arg2[%c0, %c0_0] : memref<16x32xbf16, #tpu.memory_space<vmem>>, vector<16x32xbf16>
    %c0_1 = arith.constant 0 : index
    %c0_2 = arith.constant 0 : index
    %1 = vector.load %arg3[%c0_1, %c0_2] : memref<32x128xbf16, #tpu.memory_space<vmem>>, vector<32x128xbf16>
    %cst = arith.constant dense<0.000000e+00> : vector<16x128xf32>
    %2 = tpu.matmul %0, %1, %cst {dimension_numbers = #tpu.dot_dimension_numbers<[1], [0], [0], [1], [0, 0, 1, 1], [], []>} : vector<16x32xbf16>, vector<32x128xbf16>, vector<16x128xf32> -> vector<16x128xf32>
    %c0_3 = arith.constant 0 : index
    %c0_4 = arith.constant 0 : index
    %3 = vector.load %arg4[%c0_3, %c0_4] : memref<1x128xf32, #tpu.memory_space<vmem>>, vector<1x128xf32>
    %4 = vector.broadcast %3 : vector<1x128xf32> to vector<16x128xf32>
    %5 = arith.addf %2, %4 : vector<16x128xf32>
    %6 = math.tanh %5 : vector<16x128xf32>
    %7 = arith.truncf %6 : vector<16x128xf32> to vector<16x128xbf16>
    %c0_5 = arith.constant 0 : index
    %c0_6 = arith.constant 0 : index
    %8 = vector.load %arg5[%c0_5, %c0_6] : memref<128x128xbf16, #tpu.memory_space<vmem>>, vector<128x128xbf16>
    %cst_7 = arith.constant dense<0.000000e+00> : vector<16x128xf32>
    %9 = tpu.matmul %7, %8, %cst_7 {dimension_numbers = #tpu.dot_dimension_numbers<[1], [0], [0], [1], [0, 0, 1, 1], [], []>} : vector<16x128xbf16>, vector<128x128xbf16>, vector<16x128xf32> -> vector<16x128xf32>
    %c0_8 = arith.constant 0 : index
    %c0_9 = arith.constant 0 : index
    %10 = vector.load %arg6[%c0_8, %c0_9] : memref<1x128xf32, #tpu.memory_space<vmem>>, vector<1x128xf32>
    %11 = vector.broadcast %10 : vector<1x128xf32> to vector<16x128xf32>
    %12 = arith.addf %9, %11 : vector<16x128xf32>
    %c0_10 = arith.constant 0 : index
    %c0_11 = arith.constant 0 : index
    %13 = vector.load %arg7[%c0_10, %c0_11] : memref<16x128xf32, #tpu.memory_space<vmem>>, vector<16x128xf32>
    tpu.vector_store %arg7[%c0_10, %c0_11], %12 {strides = array<i32>} : memref<16x128xf32, #tpu.memory_space<vmem>>, vector<16x128xf32>,
    return
  }
  func.func @transform_0(%arg0: i32, %arg1: i32) -> (i32, i32) {
    %c0_i32 = arith.constant 0 : i32
    %c0_i32_0 = arith.constant 0 : i32
    return %arg0, %c0_i32 : i32, i32
  }
  func.func @transform_1(%arg0: i32, %arg1: i32) -> (i32, i32) {
    %c0_i32 = arith.constant 0 : i32
    %c0_i32_0 = arith.constant 0 : i32
    %c0_i32_1 = arith.constant 0 : i32
    return %c0_i32, %c0_i32_0 : i32, i32
  }
  func.func @transform_2(%arg0: i32, %arg1: i32) -> (i32, i32) {
    %c0_i32 = arith.constant 0 : i32
    %c0_i32_0 = arith.constant 0 : i32
    %c0_i32_1 = arith.constant 0 : i32
    return %c0_i32, %c0_i32_0 : i32, i32
  }
  func.func @transform_3(%arg0: i32, %arg1: i32) -> (i32, i32) {
    %c0_i32 = arith.constant 0 : i32
    %c0_i32_0 = arith.constant 0 : i32
    return %c0_i32, %arg1 : i32, i32
  }
  func.func @transform_4(%arg0: i32, %arg1: i32) -> (i32, i32) {
    %c0_i32 = arith.constant 0 : i32
    %c0_i32_0 = arith.constant 0 : i32
    return %c0_i32, %arg1 : i32, i32
  }
  func.func @transform_5(%arg0: i32, %arg1: i32) -> (i32, i32) {
    %c0_i32 = arith.constant 0 : i32
    return %arg0, %arg1 : i32, i32
  }
}

module attributes {stable_mosaic.version = 11 : i64} {
  func.func @_ms_model_em_kernel(%arg0: i32, %arg1: i32, %arg2: memref<16x32xbf16, #tpu.memory_space<vmem>>, %arg3: memref<32x128xbf16, #tpu.memory_space<vmem>>, %arg4: memref<1x128xf32, #tpu.memory_space<vmem>>, %arg5: memref<128x128xbf16, #tpu.memory_space<vmem>>, %arg6: memref<1x128xf32, #tpu.memory_space<vmem>>, %arg7: memref<16x128xf32, #tpu.memory_space<vmem>>) attributes {dimension_semantics = [#tpu.dimension_semantics<parallel>, #tpu.dimension_semantics<parallel>], iteration_bounds = array<i64: 1, 1>, scalar_prefetch = 0 : i64, scratch_operands = 0 : i64, tpu.core_type = #tpu.core_type<tc>, window_params = [{transform_indices = @transform_0, window_bounds = array<i64: 16, 32>}, {pipeline_mode = #tpu.pipeline_mode<synchronous>, transform_indices = @transform_1, window_bounds = array<i64: 32, 128>}, {pipeline_mode = #tpu.pipeline_mode<synchronous>, transform_indices = @transform_2, window_bounds = array<i64: 1, 128>}, {transform_indices = @transform_3, window_bounds = array<i64: 128, 128>}, {transform_indices = @transform_4, window_bounds = array<i64: 1, 128>}, {transform_indices = @transform_5, window_bounds = array<i64: 16, 128>}]} {
    %c0 = arith.constant 0 : index
    %c0_0 = arith.constant 0 : index
    %0 = vector.load %arg2[%c0, %c0_0] : memref<16x32xbf16, #tpu.memory_space<vmem>>, vector<16x32xbf16>
    %c0_1 = arith.constant 0 : index
    %c0_2 = arith.constant 0 : index
    %1 = vector.load %arg3[%c0_1, %c0_2] : memref<32x128xbf16, #tpu.memory_space<vmem>>, vector<32x128xbf16>
    %cst = arith.constant dense<0.000000e+00> : vector<16x128xf32>
    %2 = tpu.matmul %0, %1, %cst {dimension_numbers = #tpu.dot_dimension_numbers<[1], [0], [0], [1], [0, 0, 1, 1], [], []>} : vector<16x32xbf16>, vector<32x128xbf16>, vector<16x128xf32> -> vector<16x128xf32>
    %c0_3 = arith.constant 0 : index
    %c0_4 = arith.constant 0 : index
    %3 = vector.load %arg4[%c0_3, %c0_4] : memref<1x128xf32, #tpu.memory_space<vmem>>, vector<1x128xf32>
    %4 = vector.broadcast %3 : vector<1x128xf32> to vector<16x128xf32>
    %5 = arith.addf %2, %4 : vector<16x128xf32>
    %6 = math.tanh %5 : vector<16x128xf32>
    %7 = arith.truncf %6 : vector<16x128xf32> to vector<16x128xbf16>
    %c0_5 = arith.constant 0 : index
    %c0_6 = arith.constant 0 : index
    %8 = vector.load %arg5[%c0_5, %c0_6] : memref<128x128xbf16, #tpu.memory_space<vmem>>, vector<128x128xbf16>
    %cst_7 = arith.constant dense<0.000000e+00> : vector<16x128xf32>
    %9 = tpu.matmul %7, %8, %cst_7 {dimension_numbers = #tpu.dot_dimension_numbers<[1], [0], [0], [1], [0, 0, 1, 1], [], []>} : vector<16x128xbf16>, vector<128x128xbf16>, vector<16x128xf32> -> vector<16x128xf32>
    %c0_8 = arith.constant 0 : index
    %c0_9 = arith.constant 0 : index
    %10 = vector.load %arg6[%c0_8, %c0_9] : memref<1x128xf32, #tpu.memory_space<vmem>>, vector<1x128xf32>
    %11 = vector.broadcast %10 : vector<1x128xf32> to vector<16x128xf32>
    %12 = arith.addf %9, %11 : vector<16x128xf32>
    %c0_10 = arith.constant 0 : index
    %c0_11 = arith.constant 0 : index
    %13 = vector.load %arg7[%c0_10, %c0_11] : memref<16x128xf32, #tpu.memory_space<vmem>>, vector<16x128xf32>
    tpu.vector_store %arg7[%c0_10, %c0_11], %12 {strides = array<i32>} : memref<16x128xf32, #tpu.memory_space<vmem>>, vector<16x128xf32>,
    return
  }
  func.func @transform_0(%arg0: i32, %arg1: i32) -> (i32, i32) {
    %c0_i32 = arith.constant 0 : i32
    %c0_i32_0 = arith.constant 0 : i32
    return %arg0, %c0_i32 : i32, i32
  }
  func.func @transform_1(%arg0: i32, %arg1: i32) -> (i32, i32) {
    %c0_i32 = arith.constant 0 : i32
    %c0_i32_0 = arith.constant 0 : i32
    %c0_i32_1 = arith.constant 0 : i32
    return %c0_i32, %c0_i32_0 : i32, i32
  }
  func.func @transform_2(%arg0: i32, %arg1: i32) -> (i32, i32) {
    %c0_i32 = arith.constant 0 : i32
    %c0_i32_0 = arith.constant 0 : i32
    %c0_i32_1 = arith.constant 0 : i32
    return %c0_i32, %c0_i32_0 : i32, i32
  }
  func.func @transform_3(%arg0: i32, %arg1: i32) -> (i32, i32) {
    %c0_i32 = arith.constant 0 : i32
    %c0_i32_0 = arith.constant 0 : i32
    return %c0_i32, %arg1 : i32, i32
  }
  func.func @transform_4(%arg0: i32, %arg1: i32) -> (i32, i32) {
    %c0_i32 = arith.constant 0 : i32
    %c0_i32_0 = arith.constant 0 : i32
    return %c0_i32, %arg1 : i32, i32
  }
  func.func @transform_5(%arg0: i32, %arg1: i32) -> (i32, i32) {
    %c0_i32 = arith.constant 0 : i32
    return %arg0, %arg1 : i32, i32
  }
}

</mosaic_0001>

<bundles_post_ra>
// kernel: tpu_custom_call.1
= control target key start
LH: loop header
LB: loop body
LE: loop exit
PB: predicated region body
PF: predicated region fallthrough
CT: control target
= control target key end

     0   :  { %10 = vsyncpa [#allocation3], 0  ;;  %s556_s0 = inlined_call_operand.hbm [shape: bf16[16,32], index: 0, kind: input, shape index: {}]   ;;  %s557_s1 = inlined_call_operand.hbm [shape: bf16[32,128], index: 1, kind: input, shape index: {}]   ;;  %s558_s2 = inlined_call_operand.vmem [shape: f32[1,128], index: 2, kind: input, shape index: {}]   ;;  %s559_s3 = inlined_call_operand.hbm [shape: bf16[128,128], index: 3, kind: input, shape index: {}]   ;;  %s560_s4 = inlined_call_operand.vmem [shape: f32[1,128], index: 4, kind: input, shape index: {}]   ;;  %s561_s5 = inlined_call_operand.hbm [shape: f32[16,128], index: 5, kind: output, shape index: {}]  }
   0x1   :  { %11 = vsyncpa [#allocation6], 0 }
   0x2   :  { %12 = vsyncpa [#allocation4], 0  ;;  %s446_s18 = smov [#allocation5]   ;;  %s447_s20 = smov [#allocation2]  }
   0x3   :  { %s30_s19 = sshll.u32 %s446_s18, 4  ;;  %s18_s21 = sshll.u32 %s447_s20, 4  ;;  %s31_s19 = int_to_ptr.vmem [resolvable:$true] %s30_s19  ;;  %s486_s21 = int_to_ptr.vmem [resolvable:$true] %s18_s21 }
   0x4   :  { %s352_s24 = scalar_lea.hbm %s557_s1, 256 }
   0x5   :  { %p353_p0 = scmp.ne.s32.totalorder %s557_s1, %s352_s24  ;;  %p356_p1 = scmp.lt.u32.totalorder %s352_s24, %s557_s1 }
   0x7   :  { %p358_p2 = pnand %p356_p1, %p353_p0 }
   0x9   :  { %361 = shalt.err (!%p358_p2)
}
   0xa   :  { %s362_s29 = scalar_lea.vmem %s31_s19, 256  ;;  %p367_p4 = scmp.lt.s32.totalorder %s31_s19, %s31_s19 }
   0xb   :  { %p363_p3 = scmp.ne.s32.totalorder %s31_s19, %s362_s29  ;;  %p368_p5 = scmp.lt.s32.totalorder %s362_s29, %s362_s29 }
   0xd   :  { %p369_p6 = por %p368_p5, %p367_p4 }
   0xf   :  { %p370_p7 = pnand %p369_p6, %p363_p3 }
  0x11   :  { %373 = shalt.err (!%p370_p7)
}
  0x12   :  { %s448_s30 = smov 64   ;;  %s449_s6 = smov 4  }
  0x13   :  { %36 = dma.hbm_to_vmem [thread:$0]  %s557_s1, 256, %s31_s19, [#allocation6], %s448_s30, %s448_s30, %s449_s6  }
  0x14   :  { %s374_s11 = scalar_lea.hbm %s556_s0, 128 }
  0x15   :  { %p375_p8 = scmp.ne.s32.totalorder %s556_s0, %s374_s11  ;;  %p378_p9 = scmp.lt.u32.totalorder %s374_s11, %s556_s0 }
  0x17   :  { %p380_p10 = pnand %p378_p9, %p375_p8 }
  0x19   :  { %383 = shalt.err (!%p380_p10)
}
  0x1a   :  { %s384_s16 = scalar_lea.vmem %s486_s21, 128  ;;  %p389_p12 = scmp.lt.s32.totalorder %s486_s21, %s486_s21 }
  0x1b   :  { %p385_p11 = scmp.ne.s32.totalorder %s486_s21, %s384_s16  ;;  %p390_p13 = scmp.lt.s32.totalorder %s384_s16, %s384_s16 }
  0x1d   :  { %p391_p0 = por %p390_p13, %p389_p12 }
  0x1f   :  { %p392_p1 = pnand %p391_p0, %p385_p11 }
  0x21   :  { %395 = shalt.err (!%p392_p1)
}
  0x22   :  { %24 = dma.hbm_to_vmem [thread:$0]  %s556_s0, 128, %s486_s21, [#allocation3], %s448_s30, %s448_s30, %s449_s6  }
  0x23   :  { %s450_s18 = smov [#allocation7]   ;;  %s396_s23 = scalar_lea.hbm %s559_s3, 1024 }
  0x24   :  { %s44_s19 = sshll.u32 %s450_s18, 4  ;;  %p397_p2 = scmp.ne.s32.totalorder %s559_s3, %s396_s23  ;;  %s45_s19 = int_to_ptr.vmem [resolvable:$true] %s44_s19 }
  0x25   :  { %p400_p3 = scmp.lt.u32.totalorder %s396_s23, %s559_s3 }
  0x27   :  { %p402_p4 = pnand %p400_p3, %p397_p2 }
  0x29   :  { %405 = shalt.err (!%p402_p4)
}
  0x2a   :  { %s406_s28 = scalar_lea.vmem %s45_s19, 1024  ;;  %p411_p6 = scmp.lt.s32.totalorder %s45_s19, %s45_s19 }
  0x2b   :  { %p407_p5 = scmp.ne.s32.totalorder %s45_s19, %s406_s28  ;;  %p412_p7 = scmp.lt.s32.totalorder %s406_s28, %s406_s28 }
  0x2d   :  { %p413_p8 = por %p412_p7, %p411_p6 }
  0x2f   :  { %p414_p9 = pnand %p413_p8, %p407_p5 }
  0x31   :  { %417 = shalt.err (!%p414_p9)
}
  0x32   :  { %50 = dma.hbm_to_vmem [thread:$0]  %s559_s3, 1024, %s45_s19, [#allocation6], %s448_s30, %s448_s30, %s449_s6  }
  0x33   :  { %440 = dma.done.wait [#allocation3], 128  }
  0x34   :  { %441 = vsyncadd [#allocation3], 4294967168 }
  0x35   :  { %442 = dma.done.wait [#allocation6], 1280  }
  0x36   :  { %443 = vsyncadd [#allocation6], 4294966016  ;;  %v451_v0 = vmov 0.0   ;;  %vm452_vm0 = vmmov 0   ;;  %v337_v1 = vld [vmem:[#allocation5] sm:$0xff]   ;;  %v338_v2 = vld [vmem:[#allocation5 + $0x8] sm:$0xff]  }
  0x37   :  { %299 = vmatprep.subr.bf16.mxu0 %v451_v0  ;;  %303 = vmatprep.mubr.msk.bf16.mxu0 %vm452_vm0, %v451_v0  ;;  %v340_v3 = vld [vmem:[#allocation7] sm:$0xff]   ;;  %v339_v4 = vld [vmem:[#allocation2] sm:$0xff]   ;;  %vm93_vm1 = vcmask 261120   ;;  %v342_v6 = vld [vmem:[#allocation7 + $0x10] sm:$0xff]   ;;  %s453_s7 = smov [#allocation8]  }
  0x38   :  { %307 = vmatprep.subr.bf16.mxu1 %v451_v0  ;;  %323 = vmatprep.mubr.msk.bf16.mxu1 %vm452_vm0, %v451_v0  ;;  %v341_v5 = vld [vmem:[#allocation7 + $0x8] sm:$0xff]   ;;  %v343_v7 = vld [vmem:[#allocation7 + $0x18] sm:$0xff]   ;;  %v344_v8 = vld [vmem:[#allocation7 + $0x20] sm:$0xff]   ;;  %s260_s8 = sshll.u32 %s453_s7, 4  ;;  %s261_s8 = int_to_ptr.vmem [resolvable:$true] %s260_s8 }
  0x39   :  { %300 = vmatpush3.bf16.msra.mxu0 %v337_v1  ;;  %308 = vmatpush3.bf16.msra.mxu1 %v340_v3  ;;  %v345_v9 = vld [vmem:[#allocation7 + $0x28] sm:$0xff]   ;;  %v346_v10 = vld [vmem:[#allocation7 + $0x30] sm:$0xff]   ;;  %v347_v11 = vld [vmem:[#allocation7 + $0x38] sm:$0xff]   ;;  %p423_p11 = scmp.lt.s32.totalorder %s261_s8, %s261_s8 }
  0x3a   :  { %301 = vmatprep.subr.bf16.mxu0 %v451_v0  ;;  %309 = vmatprep.subr.bf16.mxu1 %v451_v0  ;;  %v273_v12 = vld [vmem:[%s558_s2] ss:$0 sm:$0xff]  ;;  %s418_s2 = scalar_lea.vmem %s261_s8, 256 }
  0x3b   :  { %v278_v22 = vld [vmem:[%s560_s4] ss:$0 sm:$0xff]  ;;  %p419_p10 = scmp.ne.s32.totalorder %s261_s8, %s418_s2  ;;  %p424_p12 = scmp.lt.s32.totalorder %s418_s2, %s418_s2 }
  0x3d   :  { %302 = vmatpush3.bf16.msra.mxu0 %v338_v2  ;;  %310 = vmatpush3.bf16.msra.mxu1 %v341_v5  ;;  %p425_p13 = por %p424_p12, %p423_p11 }
  0x3e   :  { %311 = vmatprep.subr.bf16.mxu1 %v451_v0 }
  0x3f   :  { %p426_p0 = pnand %p425_p13, %p419_p10 }
  0x40   :  { %304 = vmatmul.mubr.msk.bf16.vlgmr.msra.gmra.mrb[0].mxu0 %vm93_vm1, %v339_v4 }
  0x41   :  { %312 = vmatpush3.bf16.msra.mxu1 %v342_v6 }
  0x42   :  { %313 = vmatprep.subr.bf16.mxu1 %v451_v0 }
  0x45   :  { %314 = vmatpush3.bf16.msra.mxu1 %v343_v7 }
  0x46   :  { %315 = vmatprep.subr.bf16.mxu1 %v451_v0 }
  0x49   :  { %316 = vmatpush3.bf16.msra.mxu1 %v344_v8 }
  0x4a   :  { %317 = vmatprep.subr.bf16.mxu1 %v451_v0 }
  0x4d   :  { %318 = vmatpush3.bf16.msra.mxu1 %v345_v9 }
  0x4e   :  { %319 = vmatprep.subr.bf16.mxu1 %v451_v0 }
  0x51   :  { %320 = vmatpush3.bf16.msra.mxu1 %v346_v10 }
  0x52   :  { %321 = vmatprep.subr.bf16.mxu1 %v451_v0 }
  0x55   :  { %322 = vmatpush3.bf16.msra.mxu1 %v347_v11 }
 0x113   :  { %v131_v13 = vpop.f32.mrb[0].mxu0 }
 0x114   :  { %v132_v14 = vadd.f32 %v273_v12, %v131_v13  ;;  %v305_v15 = vpop.f32.mrb[1].mxu0 }
 0x115   :  { %v134_v16 = vpop.f32.mrb[2].mxu0 }
 0x116   :  { %v135_v17 = vadd.f32 %v273_v12, %v134_v16  ;;  %v306_v18 = vpop.f32.mrb[3].mxu0  ;;  %348 = vtanh.f32 %v132_v14 }
 0x118   :  { %350 = vtanh.f32 %v135_v17 }
 0x120   :  { %v349_v19 = vpop.eup %348 }
 0x122   :  { %v351_v20 = vpop.eup %350 }
 0x123   :  { %v140_v21 = vpack.c.bf16 %v351_v20, %v349_v19 }
 0x125   :  { %324 = vmatmul.mubr.bf16.vlgmr.msra.gmra.mrb[0].mxu1 %v140_v21 }
 0x1f8   :  { %v246_v23 = vpop.f32.mrb[0].mxu1 }
 0x1f9   :  { %v247_v24 = vadd.f32 %v278_v22, %v246_v23  ;;  %v325_v25 = vpop.f32.mrb[1].mxu1 }
 0x1fa   :  { %v249_v26 = vpop.f32.mrb[2].mxu1 }
 0x1fb   :  { %253 = vst [vmem:[#allocation8] sm:$0xff] %v247_v24  ;;  %v250_v27 = vadd.f32 %v278_v22, %v249_v26  ;;  %v326_v28 = vpop.f32.mrb[3].mxu1 }
 0x1fd   :  { %254 = vst [vmem:[#allocation8 + $0x8] sm:$0xff] %v250_v27 }
 0x1fe   :  { %429 = shalt.err (!%p426_p0)
}
 0x1ff   :  { %s430_s10 = scalar_lea.hbm %s561_s5, 256 }
 0x200   :  { %p431_p1 = scmp.ne.s32.totalorder %s561_s5, %s430_s10  ;;  %p434_p2 = scmp.lt.u32.totalorder %s430_s10, %s561_s5 }
 0x202   :  { %p436_p3 = pnand %p434_p2, %p431_p1 }
 0x204   :  { %439 = shalt.err (!%p436_p3)
}
 0x205   :  { %s454_s15 = smov 128   ;;  %s455_s16 = smov 8  }
 0x206   :  { %266 = dma.vmem_to_hbm [thread:$0]  %s261_s8, 256, %s561_s5, [#allocation4], %s454_s15, %s454_s15, %s455_s16  }
 0x207   :  { %444 = dma.done.wait [#allocation4], 256  }
 0x208   :  { %445 = vsyncadd [#allocation4], 4294967040 }
 0x209   :  { %270 = vsyncpa [#allocation3], 1 }
 0x20a   :  { %271 = vsyncpa [#allocation6], 1 }
 0x20b   :  { %272 = vsyncpa [#allocation4], 1 }

// kernel: tpu_custom_call.1
= control target key start
LH: loop header
LB: loop body
LE: loop exit
PB: predicated region body
PF: predicated region fallthrough
CT: control target
= control target key end

     0   :  { %10 = vsyncpa [#allocation3], 0  ;;  %s556_s0 = inlined_call_operand.hbm [shape: bf16[16,32], index: 0, kind: input, shape index: {}]   ;;  %s557_s1 = inlined_call_operand.hbm [shape: bf16[32,128], index: 1, kind: input, shape index: {}]   ;;  %s558_s2 = inlined_call_operand.vmem [shape: f32[1,128], index: 2, kind: input, shape index: {}]   ;;  %s559_s3 = inlined_call_operand.hbm [shape: bf16[128,128], index: 3, kind: input, shape index: {}]   ;;  %s560_s4 = inlined_call_operand.vmem [shape: f32[1,128], index: 4, kind: input, shape index: {}]   ;;  %s561_s5 = inlined_call_operand.hbm [shape: f32[16,128], index: 5, kind: output, shape index: {}]  }
   0x1   :  { %11 = vsyncpa [#allocation6], 0 }
   0x2   :  { %12 = vsyncpa [#allocation4], 0  ;;  %s446_s18 = smov [#allocation5]   ;;  %s447_s20 = smov [#allocation2]  }
   0x3   :  { %s30_s19 = sshll.u32 %s446_s18, 4  ;;  %s18_s21 = sshll.u32 %s447_s20, 4  ;;  %s31_s19 = int_to_ptr.vmem [resolvable:$true] %s30_s19  ;;  %s486_s21 = int_to_ptr.vmem [resolvable:$true] %s18_s21 }
   0x4   :  { %s352_s24 = scalar_lea.hbm %s557_s1, 256 }
   0x5   :  { %p353_p0 = scmp.ne.s32.totalorder %s557_s1, %s352_s24  ;;  %p356_p1 = scmp.lt.u32.totalorder %s352_s24, %s557_s1 }
   0x7   :  { %p358_p2 = pnand %p356_p1, %p353_p0 }
   0x9   :  { %361 = shalt.err (!%p358_p2)
}
   0xa   :  { %s362_s29 = scalar_lea.vmem %s31_s19, 256  ;;  %p367_p4 = scmp.lt.s32.totalorder %s31_s19, %s31_s19 }
   0xb   :  { %p363_p3 = scmp.ne.s32.totalorder %s31_s19, %s362_s29  ;;  %p368_p5 = scmp.lt.s32.totalorder %s362_s29, %s362_s29 }
   0xd   :  { %p369_p6 = por %p368_p5, %p367_p4 }
   0xf   :  { %p370_p7 = pnand %p369_p6, %p363_p3 }
  0x11   :  { %373 = shalt.err (!%p370_p7)
}
  0x12   :  { %s448_s30 = smov 64   ;;  %s449_s6 = smov 4  }
  0x13   :  { %36 = dma.hbm_to_vmem [thread:$0]  %s557_s1, 256, %s31_s19, [#allocation6], %s448_s30, %s448_s30, %s449_s6  }
  0x14   :  { %s374_s11 = scalar_lea.hbm %s556_s0, 128 }
  0x15   :  { %p375_p8 = scmp.ne.s32.totalorder %s556_s0, %s374_s11  ;;  %p378_p9 = scmp.lt.u32.totalorder %s374_s11, %s556_s0 }
  0x17   :  { %p380_p10 = pnand %p378_p9, %p375_p8 }
  0x19   :  { %383 = shalt.err (!%p380_p10)
}
  0x1a   :  { %s384_s16 = scalar_lea.vmem %s486_s21, 128  ;;  %p389_p12 = scmp.lt.s32.totalorder %s486_s21, %s486_s21 }
  0x1b   :  { %p385_p11 = scmp.ne.s32.totalorder %s486_s21, %s384_s16  ;;  %p390_p13 = scmp.lt.s32.totalorder %s384_s16, %s384_s16 }
  0x1d   :  { %p391_p0 = por %p390_p13, %p389_p12 }
  0x1f   :  { %p392_p1 = pnand %p391_p0, %p385_p11 }
  0x21   :  { %395 = shalt.err (!%p392_p1)
}
  0x22   :  { %24 = dma.hbm_to_vmem [thread:$0]  %s556_s0, 128, %s486_s21, [#allocation3], %s448_s30, %s448_s30, %s449_s6  }
  0x23   :  { %s450_s18 = smov [#allocation7]   ;;  %s396_s23 = scalar_lea.hbm %s559_s3, 1024 }
  0x24   :  { %s44_s19 = sshll.u32 %s450_s18, 4  ;;  %p397_p2 = scmp.ne.s32.totalorder %s559_s3, %s396_s23  ;;  %s45_s19 = int_to_ptr.vmem [resolvable:$true] %s44_s19 }
  0x25   :  { %p400_p3 = scmp.lt.u32.totalorder %s396_s23, %s559_s3 }
  0x27   :  { %p402_p4 = pnand %p400_p3, %p397_p2 }
  0x29   :  { %405 = shalt.err (!%p402_p4)
}
  0x2a   :  { %s406_s28 = scalar_lea.vmem %s45_s19, 1024  ;;  %p411_p6 = scmp.lt.s32.totalorder %s45_s19, %s45_s19 }
  0x2b   :  { %p407_p5 = scmp.ne.s32.totalorder %s45_s19, %s406_s28  ;;  %p412_p7 = scmp.lt.s32.totalorder %s406_s28, %s406_s28 }
  0x2d   :  { %p413_p8 = por %p412_p7, %p411_p6 }
  0x2f   :  { %p414_p9 = pnand %p413_p8, %p407_p5 }
  0x31   :  { %417 = shalt.err (!%p414_p9)
}
  0x32   :  { %50 = dma.hbm_to_vmem [thread:$0]  %s559_s3, 1024, %s45_s19, [#allocation6], %s448_s30, %s448_s30, %s449_s6  }
  0x33   :  { %440 = dma.done.wait [#allocation3], 128  }
  0x34   :  { %441 = vsyncadd [#allocation3], 4294967168 }
  0x35   :  { %442 = dma.done.wait [#allocation6], 1280  }
  0x36   :  { %443 = vsyncadd [#allocation6], 4294966016  ;;  %v451_v0 = vmov 0.0   ;;  %vm452_vm0 = vmmov 0   ;;  %v337_v1 = vld [vmem:[#allocation5] sm:$0xff]   ;;  %v338_v2 = vld [vmem:[#allocation5 + $0x8] sm:$0xff]  }
  0x37   :  { %299 = vmatprep.subr.bf16.mxu0 %v451_v0  ;;  %303 = vmatprep.mubr.msk.bf16.mxu0 %vm452_vm0, %v451_v0  ;;  %v340_v3 = vld [vmem:[#allocation7] sm:$0xff]   ;;  %v339_v4 = vld [vmem:[#allocation2] sm:$0xff]   ;;  %vm93_vm1 = vcmask 261120   ;;  %v342_v6 = vld [vmem:[#allocation7 + $0x10] sm:$0xff]   ;;  %s453_s7 = smov [#allocation8]  }
  0x38   :  { %307 = vmatprep.subr.bf16.mxu1 %v451_v0  ;;  %323 = vmatprep.mubr.msk.bf16.mxu1 %vm452_vm0, %v451_v0  ;;  %v341_v5 = vld [vmem:[#allocation7 + $0x8] sm:$0xff]   ;;  %v343_v7 = vld [vmem:[#allocation7 + $0x18] sm:$0xff]   ;;  %v344_v8 = vld [vmem:[#allocation7 + $0x20] sm:$0xff]   ;;  %s260_s8 = sshll.u32 %s453_s7, 4  ;;  %s261_s8 = int_to_ptr.vmem [resolvable:$true] %s260_s8 }
  0x39   :  { %300 = vmatpush3.bf16.msra.mxu0 %v337_v1  ;;  %308 = vmatpush3.bf16.msra.mxu1 %v340_v3  ;;  %v345_v9 = vld [vmem:[#allocation7 + $0x28] sm:$0xff]   ;;  %v346_v10 = vld [vmem:[#allocation7 + $0x30] sm:$0xff]   ;;  %v347_v11 = vld [vmem:[#allocation7 + $0x38] sm:$0xff]   ;;  %p423_p11 = scmp.lt.s32.totalorder %s261_s8, %s261_s8 }
  0x3a   :  { %301 = vmatprep.subr.bf16.mxu0 %v451_v0  ;;  %309 = vmatprep.subr.bf16.mxu1 %v451_v0  ;;  %v273_v12 = vld [vmem:[%s558_s2] ss:$0 sm:$0xff]  ;;  %s418_s2 = scalar_lea.vmem %s261_s8, 256 }
  0x3b   :  { %v278_v22 = vld [vmem:[%s560_s4] ss:$0 sm:$0xff]  ;;  %p419_p10 = scmp.ne.s32.totalorder %s261_s8, %s418_s2  ;;  %p424_p12 = scmp.lt.s32.totalorder %s418_s2, %s418_s2 }
  0x3d   :  { %302 = vmatpush3.bf16.msra.mxu0 %v338_v2  ;;  %310 = vmatpush3.bf16.msra.mxu1 %v341_v5  ;;  %p425_p13 = por %p424_p12, %p423_p11 }
  0x3e   :  { %311 = vmatprep.subr.bf16.mxu1 %v451_v0 }
  0x3f   :  { %p426_p0 = pnand %p425_p13, %p419_p10 }
  0x40   :  { %304 = vmatmul.mubr.msk.bf16.vlgmr.msra.gmra.mrb[0].mxu0 %vm93_vm1, %v339_v4 }
  0x41   :  { %312 = vmatpush3.bf16.msra.mxu1 %v342_v6 }
  0x42   :  { %313 = vmatprep.subr.bf16.mxu1 %v451_v0 }
  0x45   :  { %314 = vmatpush3.bf16.msra.mxu1 %v343_v7 }
  0x46   :  { %315 = vmatprep.subr.bf16.mxu1 %v451_v0 }
  0x49   :  { %316 = vmatpush3.bf16.msra.mxu1 %v344_v8 }
  0x4a   :  { %317 = vmatprep.subr.bf16.mxu1 %v451_v0 }
  0x4d   :  { %318 = vmatpush3.bf16.msra.mxu1 %v345_v9 }
  0x4e   :  { %319 = vmatprep.subr.bf16.mxu1 %v451_v0 }
  0x51   :  { %320 = vmatpush3.bf16.msra.mxu1 %v346_v10 }
  0x52   :  { %321 = vmatprep.subr.bf16.mxu1 %v451_v0 }
  0x55   :  { %322 = vmatpush3.bf16.msra.mxu1 %v347_v11 }
 0x113   :  { %v131_v13 = vpop.f32.mrb[0].mxu0 }
 0x114   :  { %v132_v14 = vadd.f32 %v273_v12, %v131_v13  ;;  %v305_v15 = vpop.f32.mrb[1].mxu0 }
 0x115   :  { %v134_v16 = vpop.f32.mrb[2].mxu0 }
 0x116   :  { %v135_v17 = vadd.f32 %v273_v12, %v134_v16  ;;  %v306_v18 = vpop.f32.mrb[3].mxu0  ;;  %348 = vtanh.f32 %v132_v14 }
 0x118   :  { %350 = vtanh.f32 %v135_v17 }
 0x120   :  { %v349_v19 = vpop.eup %348 }
 0x122   :  { %v351_v20 = vpop.eup %350 }
 0x123   :  { %v140_v21 = vpack.c.bf16 %v351_v20, %v349_v19 }
 0x125   :  { %324 = vmatmul.mubr.bf16.vlgmr.msra.gmra.mrb[0].mxu1 %v140_v21 }
 0x1f8   :  { %v246_v23 = vpop.f32.mrb[0].mxu1 }
 0x1f9   :  { %v247_v24 = vadd.f32 %v278_v22, %v246_v23  ;;  %v325_v25 = vpop.f32.mrb[1].mxu1 }
 0x1fa   :  { %v249_v26 = vpop.f32.mrb[2].mxu1 }
 0x1fb   :  { %253 = vst [vmem:[#allocation8] sm:$0xff] %v247_v24  ;;  %v250_v27 = vadd.f32 %v278_v22, %v249_v26  ;;  %v326_v28 = vpop.f32.mrb[3].mxu1 }
 0x1fd   :  { %254 = vst [vmem:[#allocation8 + $0x8] sm:$0xff] %v250_v27 }
 0x1fe   :  { %429 = shalt.err (!%p426_p0)
}
 0x1ff   :  { %s430_s10 = scalar_lea.hbm %s561_s5, 256 }
 0x200   :  { %p431_p1 = scmp.ne.s32.totalorder %s561_s5, %s430_s10  ;;  %p434_p2 = scmp.lt.u32.totalorder %s430_s10, %s561_s5 }
 0x202   :  { %p436_p3 = pnand %p434_p2, %p431_p1 }
 0x204   :  { %439 = shalt.err (!%p436_p3)
}
 0x205   :  { %s454_s15 = smov 128   ;;  %s455_s16 = smov 8  }
 0x206   :  { %266 = dma.vmem_to_hbm [thread:$0]  %s261_s8, 256, %s561_s5, [#allocation4], %s454_s15, %s454_s15, %s455_s16  }
 0x207   :  { %444 = dma.done.wait [#allocation4], 256  }
 0x208   :  { %445 = vsyncadd [#allocation4], 4294967040 }
 0x209   :  { %270 = vsyncpa [#allocation3], 1 }
 0x20a   :  { %271 = vsyncpa [#allocation6], 1 }
 0x20b   :  { %272 = vsyncpa [#allocation4], 1 }

</bundles_post_ra>
